<compile_context>
chip_gen: v7x
topology: tpu7x:2x2x1
jax: 0.10.0
libtpu: 0.0.40
codegen_flags: <defaults>
</compile_context>

<pallas_src>
import math
import functools
import numpy as np

import jax
import jax.numpy as jnp
from jax.experimental import pallas as pl
from jax.experimental.pallas import tpu as pltpu

VMEM_SPEC = pl.BlockSpec(memory_space=pltpu.MemorySpace.VMEM)

# MXU input dtype (accumulation is always f32). Set to jnp.float32 for
# bit-faithful parity checks; bf16 doubles MXU throughput on v6e/v7x.
MXU_DTYPE = jnp.bfloat16

_VMEM_LIMIT = 32 * 1024 * 1024  # explicit scoped-VMEM limit (fits v5e/v6e/v7x)

# canonical ordering of the per-block (depth-stacked) parameters
_BLOCK_KEYS = ('n1g', 'n1b', 'wqkv', 'bqkv', 'pw', 'pb',
               'n2g', 'n2b', 'w1', 'b1', 'w2', 'b2')


# --------------------------- in-kernel helpers -----------------------------

def _layernorm(x, g, b, eps=1e-5):
    mu = jnp.mean(x, axis=-1, keepdims=True)
    var = jnp.mean(jnp.square(x - mu), axis=-1, keepdims=True)
    return (x - mu) * jax.lax.rsqrt(var + eps) * g + b


def _erf(x):
    # Abramowitz & Stegun 7.1.26 rational approximation; the divide is an
    # approx reciprocal (EUP slot) -- its error is far below the bf16 cast
    # applied to the GELU output before fc2.
    a1, a2, a3, a4, a5 = 0.254829592, -0.284496736, 1.421413741, -1.453152027, 1.061405429
    t = pl.reciprocal(1.0 + 0.3275911 * jnp.abs(x), approx=True)
    poly = ((((a5 * t + a4) * t + a3) * t + a2) * t + a1) * t
    y = 1.0 - poly * jnp.exp(-x * x)
    return jnp.where(x >= 0.0, y, -y)


def _gelu_exact(x):
    # nn.GELU default (erf form), not the tanh approximation.
    return 0.5 * x * (1.0 + _erf(x * 0.7071067811865476))


def _block_apply(x, w, *, S, num_heads, scale):
    """One pre-LN ViT block on a batch-folded (M, D) residual stream.

    M = B*S tokens; attention is restricted to each S-row group (one image)
    with a block-diagonal mask, and heads are packed along the M axis so QK^T
    and PV are ONE MXU matmul each (instead of a per-head loop)."""
    n1g, n1b, wqkv, bqkv, pw, pb, n2g, n2b, w1, b1, w2, b2 = w
    M, D = x.shape
    H = num_heads
    Dh = D // H
    HM = H * M

    # ---- attention branch: x = x + proj(attn(LN1(x))) ----
    h = _layernorm(x, n1g, n1b).astype(MXU_DTYPE)
    qkv = jnp.dot(h, wqkv, preferred_element_type=jnp.float32) + bqkv    # (M, 3D)
    q = qkv[:, :D]
    k = qkv[:, D:2 * D].astype(MXU_DTYPE)
    v = qkv[:, 2 * D:].astype(MXU_DTYPE)

    # heads packed along rows: rows [h*M:(h+1)*M] carry head h with the other
    # heads' channel lanes zeroed, so Q_all @ K^T yields every head's scores
    # in one MXU push (row block h == Q_h K_h^T).
    row_head = jax.lax.broadcasted_iota(jnp.int32, (HM, D), 0) // M
    col_head = jax.lax.broadcasted_iota(jnp.int32, (HM, D), 1) // Dh
    head_mask = (row_head == col_head).astype(jnp.float32)               # (HM, D)
    q_all = (jnp.concatenate([q] * H, axis=0) * head_mask * scale).astype(MXU_DTYPE)

    s = jnp.einsum('md,nd->mn', q_all, k,
                   preferred_element_type=jnp.float32)                   # (HM, M)
    # block-diagonal batch mask: queries only attend inside their own image.
    q_img = (jax.lax.broadcasted_iota(jnp.int32, (HM, M), 0) % M) // S
    k_img = jax.lax.broadcasted_iota(jnp.int32, (HM, M), 1) // S
    s = jnp.where(q_img == k_img, s, -1e30)
    s = s - jnp.max(s, axis=-1, keepdims=True)
    p = jnp.exp(s)
    p = p * pl.reciprocal(jnp.sum(p, axis=-1, keepdims=True), approx=True)
    pv = jnp.dot(p.astype(MXU_DTYPE), v,
                 preferred_element_type=jnp.float32)                     # (HM, D)
    pv = pv * head_mask
    attn = pv[0:M]
    for hh in range(1, H):                                               # static, 8-aligned
        attn = attn + pv[hh * M:(hh + 1) * M]
    x = x + jnp.dot(attn.astype(MXU_DTYPE), pw,
                    preferred_element_type=jnp.float32) + pb

    # ---- MLP branch: x = x + fc2(GELU(fc1(LN2(x)))) ----
    h2 = _layernorm(x, n2g, n2b).astype(MXU_DTYPE)
    t = jnp.dot(h2, w1, preferred_element_type=jnp.float32) + b1
    t = _gelu_exact(t).astype(MXU_DTYPE)
    t = jnp.dot(t, w2, preferred_element_type=jnp.float32) + b2
    return x + t


# ----------------- fused dual patch-embed (one pallas_call) ----------------

def _dual_embed_kernel(xp_ref, pos_ref, w1_ref, b1_ref, w2_ref, b2_ref,
                       o1_ref, o2_ref):
    xp = xp_ref[...].astype(MXU_DTYPE)                    # (B*N, C*p*p)
    o1_ref[...] = jnp.dot(xp, w1_ref[...], preferred_element_type=jnp.float32) + b1_ref[...]
    # auxi branch gets its positional embedding fused in here.
    o2_ref[...] = (jnp.dot(xp, w2_ref[...], preferred_element_type=jnp.float32)
                   + b2_ref[...] + pos_ref[...])


def dual_patch_embed(xp, pos_flat, w1, b1, w2, b2):
    BN, _ = xp.shape
    D = w1.shape[1]
    return pl.pallas_call(
        _dual_embed_kernel,
        out_shape=(jax.ShapeDtypeStruct((BN, D), jnp.float32),
                   jax.ShapeDtypeStruct((BN, D), jnp.float32)),
        in_specs=[VMEM_SPEC] * 6,
        out_specs=(VMEM_SPEC, VMEM_SPEC),
        compiler_params=pltpu.CompilerParams(vmem_limit_bytes=_VMEM_LIMIT),
    )(xp, pos_flat, w1, b1, w2, b2)


# --------------- auxiliary ViT stack (all clu_depth blocks) -----------------

def _aux_stack_kernel(auxi_ref, cls_ref,
                      n1g, n1b, wqkv, bqkv, pw, pb, n2g, n2b, w1, b1, w2, b2,
                      o_ref, x_scr, *, B, N, C, num_heads, scale):
    d = pl.program_id(0)
    S = C + N

    @pl.when(d == 0)
    def _():
        # x1 = concat(cls_tokens, auxi_x + pos) per image, batch folded.
        cls = cls_ref[...]
        a = auxi_ref[...]
        parts = []
        for b in range(B):
            parts.append(cls)
            parts.append(a[b * N:(b + 1) * N, :])
        x_scr[...] = jnp.concatenate(parts, axis=0)

    x = _block_apply(
        x_scr[...],
        (n1g[...], n1b[...], wqkv[...], bqkv[...], pw[...], pb[...],
         n2g[...], n2b[...], w1[...], b1[...], w2[...], b2[...]),
        S=S, num_heads=num_heads, scale=scale)
    x_scr[...] = x

    @pl.when(d == pl.num_programs(0) - 1)
    def _():
        for b in range(B):
            o_ref[b] = x[b * S:b * S + C, :]              # cluster-center tokens


def aux_stack(auxi_pos, cls_tok, blk, *, B, N, C, num_heads):
    M, D = auxi_pos.shape                                  # M = B*N
    S = C + N
    depth = blk['wqkv'].shape[0]
    scale = (D // num_heads) ** -0.5
    w_list = [blk[k] for k in _BLOCK_KEYS]
    w_specs = [pl.BlockSpec((None,) + tuple(w.shape[1:]), lambda d: (d, 0, 0))
               for w in w_list]
    return pl.pallas_call(
        functools.partial(_aux_stack_kernel, B=B, N=N, C=C,
                          num_heads=num_heads, scale=scale),
        out_shape=jax.ShapeDtypeStruct((B, C, D), jnp.float32),
        grid=(depth,),
        in_specs=[pl.BlockSpec((M, D), lambda d: (0, 0)),
                  pl.BlockSpec((C, D), lambda d: (0, 0))] + w_specs,
        out_specs=pl.BlockSpec((B, C, D), lambda d: (0, 0, 0)),
        scratch_shapes=[pltpu.VMEM((B * S, D), jnp.float32)],
        compiler_params=pltpu.CompilerParams(
            dimension_semantics=("arbitrary",),
            vmem_limit_bytes=_VMEM_LIMIT),
    )(auxi_pos, cls_tok, *w_list)


# --- decoder ViT stack + final norm + inpainting head (one pallas_call) ----

def _dec_stack_kernel(x_ref, pos_ref, mtok_ref, keep_ref,
                      n1g, n1b, wqkv, bqkv, pw, pb, n2g, n2b, w1, b1, w2, b2,
                      ng, nb, predw, predb,
                      o_ref, x_scr, *, S, num_heads, scale):
    d = pl.program_id(0)

    @pl.when(d == 0)
    def _():
        # masked_x = where(mask==0, mask_token, x) + pos, fused here.
        keep = keep_ref[...]                               # (M, 1)
        x_scr[...] = jnp.where(keep < 0.5, mtok_ref[...], x_ref[...]) + pos_ref[...]

    x = _block_apply(
        x_scr[...],
        (n1g[...], n1b[...], wqkv[...], bqkv[...], pw[...], pb[...],
         n2g[...], n2b[...], w1[...], b1[...], w2[...], b2[...]),
        S=S, num_heads=num_heads, scale=scale)
    x_scr[...] = x

    @pl.when(d == pl.num_programs(0) - 1)
    def _():
        hN = _layernorm(x, ng[...], nb[...]).astype(MXU_DTYPE)
        o_ref[...] = jnp.dot(hN, predw[...],
                             preferred_element_type=jnp.float32) + predb[...]


def decoder_stack(x_flat, pos_flat, mask_token, keep_col, blk,
                  norm_g, norm_b, pred_w, pred_b, *, B, N, num_heads):
    M, D = x_flat.shape                                    # M = B*N
    Pd = pred_w.shape[1]
    depth = blk['wqkv'].shape[0]
    scale = (D // num_heads) ** -0.5
    w_list = [blk[k] for k in _BLOCK_KEYS]
    w_specs = [pl.BlockSpec((None,) + tuple(w.shape[1:]), lambda d: (d, 0, 0))
               for w in w_list]
    return pl.pallas_call(
        functools.partial(_dec_stack_kernel, S=N, num_heads=num_heads, scale=scale),
        out_shape=jax.ShapeDtypeStruct((M, Pd), jnp.float32),
        grid=(depth,),
        in_specs=[pl.BlockSpec((M, D), lambda d: (0, 0)),   # x (pre-pos)
                  pl.BlockSpec((M, D), lambda d: (0, 0)),   # pos (tiled)
                  pl.BlockSpec((1, D), lambda d: (0, 0)),   # mask_token
                  pl.BlockSpec((M, 1), lambda d: (0, 0))]   # keep mask
                 + w_specs
                 + [pl.BlockSpec((1, D), lambda d: (0, 0)),  # norm_g
                    pl.BlockSpec((1, D), lambda d: (0, 0)),  # norm_b
                    pl.BlockSpec((D, Pd), lambda d: (0, 0)),  # pred_w
                    pl.BlockSpec((1, Pd), lambda d: (0, 0))],  # pred_b
        out_specs=pl.BlockSpec((M, Pd), lambda d: (0, 0)),
        scratch_shapes=[pltpu.VMEM((M, D), jnp.float32)],
        compiler_params=pltpu.CompilerParams(
            dimension_semantics=("arbitrary",),
            vmem_limit_bytes=_VMEM_LIMIT),
    )(x_flat, pos_flat, mask_token, keep_col, *w_list,
      norm_g, norm_b, pred_w, pred_b)


# --------- fused anomaly score + outlier mask (one pallas_call) ------------

def _anomaly_mask_kernel(x_ref, c_ref, g_ref, b_ref, score_ref, keep_ref, *, sigma):
    eps = 1e-8
    x = x_ref[...]                                          # (N, D) tokens + pos
    c = _layernorm(c_ref[...], g_ref[...], b_ref[...])      # (C, D) norm_auxi fused
    C, D = c.shape

    # (C on sublanes, N on lanes): every reduction / elementwise op below is
    # lane-dense over tokens; min over centers is a short sublane reduce.
    dots = jnp.einsum('cd,nd->cn', c.astype(MXU_DTYPE), x.astype(MXU_DTYPE),
                      preferred_element_type=jnp.float32)   # (C, N) cross term
    xsq = jnp.einsum('od,nd->on', jnp.ones((1, D), jnp.float32), x * x,
                     preferred_element_type=jnp.float32)    # (1, N) f32 norms
    csq = jnp.sum(c * c, axis=-1, keepdims=True)            # (C, 1)
    dist = jnp.sqrt(jnp.maximum(xsq + csq - 2.0 * dots, 0.0))
    # torch F.cosine_similarity clamps each norm separately.
    denom = (jnp.maximum(jnp.sqrt(xsq), eps) *
             jnp.maximum(jnp.sqrt(csq), eps))                # (C, N)
    cos = dots * pl.reciprocal(denom, approx=True)
    score = dist * (1.0 - cos)                               # (C, N)

    # min / argmin over centers (first index attaining the min, like torch.min).
    best = jnp.min(score, axis=0, keepdims=True)             # (1, N)
    cidx = jax.lax.broadcasted_iota(jnp.int32, score.shape, 0)
    idx = jnp.min(jnp.where(score <= best, cidx, C), axis=0, keepdims=True)

    # generate_mask / find_outliers: per-cluster mean + sigma*std (unbiased)
    # threshold via one-hot segment reductions (no per-cluster Python loop).
    onehot = (cidx == idx).astype(jnp.float32)               # (C, N)
    cnt = jnp.sum(onehot, axis=1, keepdims=True)             # (C, 1)
    mean = jnp.sum(onehot * best, axis=1, keepdims=True) / jnp.maximum(cnt, 1.0)
    mean_n = jnp.sum(onehot * mean, axis=0, keepdims=True)   # (1, N)
    ssq = jnp.sum(onehot * jnp.square(best - mean_n), axis=1, keepdims=True)
    std = jnp.sqrt(ssq / jnp.maximum(cnt - 1.0, 1.0))
    thr = mean + sigma * std                                 # (C, 1)
    thr_n = jnp.sum(onehot * thr, axis=0, keepdims=True)     # (1, N)
    cnt_n = jnp.sum(onehot * cnt, axis=0, keepdims=True)     # (1, N)
    # clusters with a single member are never outliers (torch skips len<=1).
    is_out = jnp.logical_and(best >= thr_n, cnt_n > 1.5)
    score_ref[...] = best                                    # lane-dense (1, N)
    keep_ref[...] = jnp.where(is_out, 0.0, 1.0)


def anomaly_and_mask(tokens_flat, centers, g, b, sigma):
    B, C, D = centers.shape
    N = tokens_flat.shape[0] // B
    score3, keep3 = pl.pallas_call(
        functools.partial(_anomaly_mask_kernel, sigma=float(sigma)),
        out_shape=(jax.ShapeDtypeStruct((B, 1, N), jnp.float32),
                   jax.ShapeDtypeStruct((B, 1, N), jnp.float32)),
        grid=(B,),
        in_specs=[pl.BlockSpec((N, D), lambda bb: (bb, 0)),
                  pl.BlockSpec((None, C, D), lambda bb: (bb, 0, 0)),
                  pl.BlockSpec((1, D), lambda bb: (0, 0)),
                  pl.BlockSpec((1, D), lambda bb: (0, 0))],
        out_specs=(pl.BlockSpec((None, 1, N), lambda bb: (bb, 0, 0)),
                   pl.BlockSpec((None, 1, N), lambda bb: (bb, 0, 0))),
        compiler_params=pltpu.CompilerParams(
            dimension_semantics=("parallel",),
            vmem_limit_bytes=_VMEM_LIMIT),
    )(tokens_flat, centers, g, b)
    return score3[:, 0, :], keep3[:, 0, :]


# ------------------------------- glue (JAX) --------------------------------

def get_2d_sincos_pos_embed(embed_dim, grid_size):
    def get_1d(dim, pos):
        omega = np.arange(dim // 2, dtype=np.float64)
        omega /= dim / 2.0
        omega = 1.0 / 10000 ** omega
        out = np.einsum('m,d->md', pos.reshape(-1).astype(np.float64), omega)
        return np.concatenate([np.sin(out), np.cos(out)], axis=1)
    grid_h = np.arange(grid_size, dtype=np.float32)
    grid_w = np.arange(grid_size, dtype=np.float32)
    grid = np.meshgrid(grid_w, grid_h)
    grid = np.stack(grid, axis=0).reshape([2, 1, grid_size, grid_size])
    emb_h = get_1d(embed_dim // 2, grid[0])
    emb_w = get_1d(embed_dim // 2, grid[1])
    return np.concatenate([emb_h, emb_w], axis=1).astype(np.float32)


def init_params(key, *, in_chans, patch_size, embed_dim, num_patches, num_heads,
                depth, clu_depth, center_num, mlp_ratio):
    keys = iter(jax.random.split(key, 128))

    def xavier(shape):
        fan_in, fan_out = shape
        lim = math.sqrt(6.0 / (fan_in + fan_out))
        return jax.random.uniform(next(keys), shape, jnp.float32, -lim, lim)

    def block_params():
        hidden = int(embed_dim * mlp_ratio)
        return dict(
            norm1_g=jnp.ones((1, embed_dim), jnp.float32),
            norm1_b=jnp.zeros((1, embed_dim), jnp.float32),
            wq=xavier((embed_dim, embed_dim)),
            wk=xavier((embed_dim, embed_dim)),
            wv=xavier((embed_dim, embed_dim)),
            bq=jnp.zeros((1, embed_dim), jnp.float32),
            bk=jnp.zeros((1, embed_dim), jnp.float32),
            bv=jnp.zeros((1, embed_dim), jnp.float32),
            proj_w=xavier((embed_dim, embed_dim)),
            proj_b=jnp.zeros((1, embed_dim), jnp.float32),
            norm2_g=jnp.ones((1, embed_dim), jnp.float32),
            norm2_b=jnp.zeros((1, embed_dim), jnp.float32),
            fc1_w=xavier((embed_dim, hidden)),
            fc1_b=jnp.zeros((1, hidden), jnp.float32),
            fc2_w=xavier((hidden, embed_dim)),
            fc2_b=jnp.zeros((1, embed_dim), jnp.float32),
        )

    patch_dim = in_chans * patch_size * patch_size
    grid_size = int(round(num_patches ** 0.5))
    return dict(
        patch_w=xavier((patch_dim, embed_dim)),
        patch_b=jnp.zeros((1, embed_dim), jnp.float32),
        auxi_w=xavier((patch_dim, embed_dim)),
        auxi_b=jnp.zeros((1, embed_dim), jnp.float32),
        cls_token=0.02 * jax.random.normal(next(keys), (1, center_num, embed_dim), jnp.float32),
        pos_embed=jnp.asarray(get_2d_sincos_pos_embed(embed_dim, grid_size))[None],
        mask_token=jnp.zeros((1, 1, embed_dim), jnp.float32),
        auxiliary=[block_params() for _ in range(clu_depth)],
        norm_auxi_g=jnp.ones((1, embed_dim), jnp.float32),
        norm_auxi_b=jnp.zeros((1, embed_dim), jnp.float32),
        blocks=[block_params() for _ in range(depth)],
        norm_g=jnp.ones((1, embed_dim), jnp.float32),
        norm_b=jnp.zeros((1, embed_dim), jnp.float32),
        pred_w=xavier((embed_dim, patch_dim)),
        pred_b=jnp.zeros((1, patch_dim), jnp.float32),
    )


def pack_params(params):
    """One-time packing: fuse QKV, stack each stack's weights along depth,
    pre-cast matmul weights to the MXU input dtype (hoisted out of forward)."""
    def fuse(p):
        return dict(
            n1g=p['norm1_g'], n1b=p['norm1_b'],
            wqkv=jnp.concatenate([p['wq'], p['wk'], p['wv']], axis=1).astype(MXU_DTYPE),
            bqkv=jnp.concatenate([p['bq'], p['bk'], p['bv']], axis=1),
            pw=p['proj_w'].astype(MXU_DTYPE), pb=p['proj_b'],
            n2g=p['norm2_g'], n2b=p['norm2_b'],
            w1=p['fc1_w'].astype(MXU_DTYPE), b1=p['fc1_b'],
            w2=p['fc2_w'].astype(MXU_DTYPE), b2=p['fc2_b'])

    def stack(blocks):
        fused = [fuse(p) for p in blocks]
        return {k: jnp.stack([f[k] for f in fused], axis=0) for k in _BLOCK_KEYS}

    return dict(
        patch_w=params['patch_w'].astype(MXU_DTYPE), patch_b=params['patch_b'],
        auxi_w=params['auxi_w'].astype(MXU_DTYPE), auxi_b=params['auxi_b'],
        cls_token=params['cls_token'][0],                  # (C, D)
        pos_embed=params['pos_embed'][0],                  # (N, D)
        mask_token=params['mask_token'][0],                # (1, D)
        auxiliary=stack(params['auxiliary']),
        norm_auxi_g=params['norm_auxi_g'], norm_auxi_b=params['norm_auxi_b'],
        blocks=stack(params['blocks']),
        norm_g=params['norm_g'], norm_b=params['norm_b'],
        pred_w=params['pred_w'].astype(MXU_DTYPE), pred_b=params['pred_b'],
    )


def _patchify(imgs, patch):
    # Conv2d(in_chans, D, k=p, stride=p) == patchify (c, ph, pw order) + linear.
    B, C, H, W = imgs.shape
    gh, gw = H // patch, W // patch
    x = imgs.reshape(B, C, gh, patch, gw, patch)
    x = x.transpose(0, 2, 4, 1, 3, 5).reshape(B * gh * gw, C * patch * patch)
    return x, gh * gw


def forward(imgs, pk, cfg, stage="test"):
    if stage != "test":
        # TODO(synk): 'train' stage depends on Python-level RNG (random.uniform /
        # random.sample jitter, rand_mask) and the training loss; only the
        # deterministic 'test' path is implemented.
        raise NotImplementedError("only stage='test' is implemented")

    patch = cfg['patch_size']
    C = cfg['center_num']
    heads = cfg['num_heads']
    B = imgs.shape[0]

    xp, N = _patchify(imgs, patch)                          # (B*N, C*p*p)
    pos_flat = jnp.tile(pk['pos_embed'], (B, 1))            # (B*N, D), built once

    # both patch embeddings read the patchified image once; aux gets +pos fused.
    x_flat, auxi_pos = dual_patch_embed(xp, pos_flat, pk['patch_w'], pk['patch_b'],
                                        pk['auxi_w'], pk['auxi_b'])

    # auxiliary stack (cls-token concat fused in, all clu_depth blocks fused).
    centers = aux_stack(auxi_pos, pk['cls_token'], pk['auxiliary'],
                        B=B, N=N, C=C, num_heads=heads)     # (B, C, D)

    # anomaly score + outlier mask (norm_auxi fused inside), lane-dense outputs.
    score, keep = anomaly_and_mask(auxi_pos, centers,
                                   pk['norm_auxi_g'], pk['norm_auxi_b'],
                                   cfg['sigma'])            # (B, N) each

    # decoder stack: mask replacement + pos + depth blocks + norm + pred head.
    pred_flat = decoder_stack(x_flat, pos_flat, pk['mask_token'],
                              keep.reshape(B * N, 1), pk['blocks'],
                              pk['norm_g'], pk['norm_b'],
                              pk['pred_w'], pk['pred_b'],
                              B=B, N=N, num_heads=heads)    # (B*N, p*p*C)
    pred = pred_flat.reshape(B, N, pred_flat.shape[-1])

    loss = 0.0   # test stage
    return loss, pred, score, keep


# --------------------------------- main -------------------------------------

if __name__ == "__main__":
    cfg = dict(img_size=16, patch_size=4, in_chans=4, embed_dim=32, depth=2,
               num_heads=4, clu_depth=1, mlp_ratio=4.0, center_num=4, sigma=2)
    num_patches = (cfg['img_size'] // cfg['patch_size']) ** 2

    key = jax.random.PRNGKey(0)
    k_params, k_img = jax.random.split(key)
    params = init_params(k_params,
                         in_chans=cfg['in_chans'], patch_size=cfg['patch_size'],
                         embed_dim=cfg['embed_dim'], num_patches=num_patches,
                         num_heads=cfg['num_heads'], depth=cfg['depth'],
                         clu_depth=cfg['clu_depth'], center_num=cfg['center_num'],
                         mlp_ratio=cfg['mlp_ratio'])
    packed = pack_params(params)   # QKV fusion / depth stacking / bf16 casts, once

    imgs = jax.random.normal(k_img, (2, cfg['in_chans'], cfg['img_size'], cfg['img_size']),
                             jnp.float32)

    loss, pred, anomaly_score, binary_anomaly = forward(imgs, packed, cfg, stage="test")
    jax.block_until_ready((pred, anomaly_score, binary_anomaly))

    assert pred.shape == (2, num_patches, cfg['patch_size'] ** 2 * cfg['in_chans'])
    assert anomaly_score.shape == (2, num_patches)
    assert binary_anomaly.shape == (2, num_patches)
    assert bool(jnp.all(jnp.isfinite(pred)))
    assert bool(jnp.all(jnp.isfinite(anomaly_score)))
    assert bool(jnp.all(jnp.isfinite(binary_anomaly)))
    print("KERNEL_OK")
</pallas_src>

<mosaic_0001>
module attributes {stable_mosaic.version = 11 : i64} {
  func.func @_dual_embed_kernel(%arg0: memref<32x64xf32, #tpu.memory_space<vmem>>, %arg1: memref<32x32xf32, #tpu.memory_space<vmem>>, %arg2: memref<64x32xbf16, #tpu.memory_space<vmem>>, %arg3: memref<1x32xf32, #tpu.memory_space<vmem>>, %arg4: memref<64x32xbf16, #tpu.memory_space<vmem>>, %arg5: memref<1x32xf32, #tpu.memory_space<vmem>>, %arg6: memref<32x32xf32, #tpu.memory_space<vmem>>, %arg7: memref<32x32xf32, #tpu.memory_space<vmem>>) attributes {dimension_semantics = [], scalar_prefetch = 0 : i64, scratch_operands = 0 : i64, tpu.core_type = #tpu.core_type<tc>} {
    %c0 = arith.constant 0 : index
    %c0_0 = arith.constant 0 : index
    %0 = vector.load %arg0[%c0, %c0_0] : memref<32x64xf32, #tpu.memory_space<vmem>>, vector<32x64xf32>
    %1 = arith.truncf %0 : vector<32x64xf32> to vector<32x64xbf16>
    %c0_1 = arith.constant 0 : index
    %c0_2 = arith.constant 0 : index
    %2 = vector.load %arg2[%c0_1, %c0_2] : memref<64x32xbf16, #tpu.memory_space<vmem>>, vector<64x32xbf16>
    %cst = arith.constant dense<0.000000e+00> : vector<32x32xf32>
    %3 = tpu.matmul %1, %2, %cst {dimension_numbers = #tpu.dot_dimension_numbers<[1], [0], [0], [1], [0, 0, 1, 1], [], []>} : vector<32x64xbf16>, vector<64x32xbf16>, vector<32x32xf32> -> vector<32x32xf32>
    %c0_3 = arith.constant 0 : index
    %c0_4 = arith.constant 0 : index
    %4 = vector.load %arg3[%c0_3, %c0_4] : memref<1x32xf32, #tpu.memory_space<vmem>>, vector<1x32xf32>
    %5 = vector.broadcast %4 : vector<1x32xf32> to vector<32x32xf32>
    %6 = arith.addf %3, %5 : vector<32x32xf32>
    %c0_5 = arith.constant 0 : index
    %c0_6 = arith.constant 0 : index
    %7 = vector.load %arg6[%c0_5, %c0_6] : memref<32x32xf32, #tpu.memory_space<vmem>>, vector<32x32xf32>
    tpu.vector_store %arg6[%c0_5, %c0_6], %6 {strides = array<i32>} : memref<32x32xf32, #tpu.memory_space<vmem>>, vector<32x32xf32>,
    %c0_7 = arith.constant 0 : index
    %c0_8 = arith.constant 0 : index
    %8 = vector.load %arg4[%c0_7, %c0_8] : memref<64x32xbf16, #tpu.memory_space<vmem>>, vector<64x32xbf16>
    %cst_9 = arith.constant dense<0.000000e+00> : vector<32x32xf32>
    %9 = tpu.matmul %1, %8, %cst_9 {dimension_numbers = #tpu.dot_dimension_numbers<[1], [0], [0], [1], [0, 0, 1, 1], [], []>} : vector<32x64xbf16>, vector<64x32xbf16>, vector<32x32xf32> -> vector<32x32xf32>
    %c0_10 = arith.constant 0 : index
    %c0_11 = arith.constant 0 : index
    %10 = vector.load %arg5[%c0_10, %c0_11] : memref<1x32xf32, #tpu.memory_space<vmem>>, vector<1x32xf32>
    %11 = vector.broadcast %10 : vector<1x32xf32> to vector<32x32xf32>
    %12 = arith.addf %9, %11 : vector<32x32xf32>
    %c0_12 = arith.constant 0 : index
    %c0_13 = arith.constant 0 : index
    %13 = vector.load %arg1[%c0_12, %c0_13] : memref<32x32xf32, #tpu.memory_space<vmem>>, vector<32x32xf32>
    %14 = arith.addf %12, %13 : vector<32x32xf32>
    %c0_14 = arith.constant 0 : index
    %c0_15 = arith.constant 0 : index
    %15 = vector.load %arg7[%c0_14, %c0_15] : memref<32x32xf32, #tpu.memory_space<vmem>>, vector<32x32xf32>
    tpu.vector_store %arg7[%c0_14, %c0_15], %14 {strides = array<i32>} : memref<32x32xf32, #tpu.memory_space<vmem>>, vector<32x32xf32>,
    return
  }
}

</mosaic_0001>

<bundles_post_ra>
// kernel: tpu_custom_call.1
= control target key start
LH: loop header
LB: loop body
LE: loop exit
PB: predicated region body
PF: predicated region fallthrough
CT: control target
= control target key end

     0   :  { %13 = vsyncpa [#allocation3], 0  ;;  %vm73_vm0 = vcmask 523264   ;;  %s524_s0 = inlined_call_operand.vmem [shape: f32[32,64], index: 0, kind: input, shape index: {}]   ;;  %s525_s1 = inlined_call_operand.vmem [shape: f32[32,32], index: 1, kind: input, shape index: {}]   ;;  %s526_s2 = inlined_call_operand.vmem [shape: bf16[64,32], index: 2, kind: input, shape index: {}]   ;;  %s527_s3 = inlined_call_operand.vmem [shape: f32[1,32], index: 3, kind: input, shape index: {}]   ;;  %s528_s4 = inlined_call_operand.vmem [shape: bf16[64,32], index: 4, kind: input, shape index: {}]   ;;  %s529_s5 = inlined_call_operand.vmem [shape: f32[1,32], index: 5, kind: input, shape index: {}]   ;;  %s530_s6 = inlined_call_operand.hbm [shape: f32[32,32], index: 6, kind: output, shape index: {0}]   ;;  %s531_s7 = inlined_call_operand.hbm [shape: f32[32,32], index: 7, kind: output, shape index: {1}]  }
   0x1   :  { %v320_v0 = vld [vmem:[%s526_s2] sm:$0xff]   ;;  %v322_v2 = vld [vmem:[%s526_s2 + $0x8] sm:$0xff]   ;;  %v324_v4 = vld [vmem:[%s526_s2 + $0x10] sm:$0xff]  }
   0x2   :  { %v321_v1 = vld [vmem:[%s528_s4] sm:$0xff]   ;;  %292 = vmatprep.subr.bf16.mxu0 %v320_v0  ;;  %v323_v3 = vld [vmem:[%s528_s4 + $0x8] sm:$0xff]   ;;  %v325_v5 = vld [vmem:[%s528_s4 + $0x10] sm:$0xff]  }
   0x3   :  { %304 = vmatprep.subr.bf16.mxu1 %v321_v1  ;;  %293 = vmatpush3.bf16.msra.mxu0 %v320_v0  ;;  %v326_v6 = vld [vmem:[%s526_s2 + $0x18] sm:$0xff]   ;;  %v28_v7 = vld [vmem:[%s524_s0] sm:$0xff]  ;;  %v29_v8 = vld [vmem:[%s524_s0 + $0x8] sm:$0xff] }
   0x4   :  { %305 = vmatpush3.bf16.msra.mxu1 %v321_v1  ;;  %294 = vmatprep.subr.bf16.mxu0 %v322_v2  ;;  %v327_v9 = vld [vmem:[%s528_s4 + $0x18] sm:$0xff]   ;;  %v32_v10 = vpack.c.bf16 %v29_v8, %v28_v7 }
   0x5   :  { %306 = vmatprep.subr.bf16.mxu1 %v323_v3 }
   0x7   :  { %295 = vmatpush3.bf16.msra.mxu0 %v322_v2 }
   0x8   :  { %307 = vmatpush3.bf16.msra.mxu1 %v323_v3  ;;  %296 = vmatprep.subr.bf16.mxu0 %v324_v4 }
   0x9   :  { %308 = vmatprep.subr.bf16.mxu1 %v325_v5 }
   0xa   :  { %14 = vsyncpa [#allocation5], 0  ;;  %300 = vmatprep.mubr.msk.bf16.mxu0 %vm73_vm0, %v32_v10  ;;  %v30_v11 = vld [vmem:[%s524_s0 + $0x10] sm:$0xff]  ;;  %v31_v12 = vld [vmem:[%s524_s0 + $0x18] sm:$0xff]  ;;  %312 = vmatprep.mubr.msk.bf16.mxu1 %vm73_vm0, %v32_v10  ;;  %vm129_vm1 = vcmask 261120   ;;  %s376_s0 = smov [#allocation2]  }
   0xb   :  { %297 = vmatpush3.bf16.msra.mxu0 %v324_v4  ;;  %v33_v13 = vpack.c.bf16 %v31_v12, %v30_v11  ;;  %v266_v14 = vld [vmem:[%s527_s3] ss:$0 sm:$0xff]  ;;  %s239_s27 = sshll.u32 %s376_s0, 4  ;;  %v224_v19 = vld [vmem:[%s525_s1 + $0x10] sm:$0xff]  ;;  %v225_v29 = vld [vmem:[%s525_s1 + $0x18] sm:$0xff]  ;;  %s377_s9 = smov [#allocation4]   ;;  %s476_s27 = int_to_ptr.vmem [resolvable:$true] %s239_s27 }
   0xc   :  { %309 = vmatpush3.bf16.msra.mxu1 %v325_v5  ;;  %298 = vmatprep.subr.bf16.mxu0 %v326_v6  ;;  %v273_v15 = vld [vmem:[%s529_s5] ss:$0 sm:$0xff]  ;;  %s251_s10 = sshll.u32 %s377_s9, 4  ;;  %v223_v35 = vld [vmem:[%s525_s1 + $0x8] sm:$0xff]  ;;  %s328_s13 = scalar_lea.vmem %s476_s27, 512  ;;  %s485_s10 = int_to_ptr.vmem [resolvable:$true] %s251_s10 }
   0xd   :  { %310 = vmatprep.subr.bf16.mxu1 %v327_v9  ;;  %v222_v24 = vld [vmem:[%s525_s1] sm:$0xff]  ;;  %p329_p0 = scmp.ne.s32.totalorder %s476_s27, %s328_s13  ;;  %p333_p1 = scmp.lt.s32.totalorder %s476_s27, %s476_s27 }
   0xe   :  { %p334_p2 = scmp.lt.s32.totalorder %s328_s13, %s328_s13 }
   0xf   :  { %299 = vmatpush3.bf16.msra.mxu0 %v326_v6 }
  0x10   :  { %311 = vmatpush3.bf16.msra.mxu1 %v327_v9  ;;  %p335_p3 = por %p334_p2, %p333_p1 }
  0x12   :  { %301 = vmatmul.mubr.msk.bf16.vlgmr.msra.gmra.mrb[0].mxu0 %vm73_vm0, %v33_v13  ;;  %p336_p4 = pnand %p335_p3, %p329_p0 }
  0x13   :  { %313 = vmatmul.mubr.msk.bf16.vlgmr.msra.gmra.mrb[0].mxu1 %vm73_vm0, %v33_v13 }
  0xe5   :  { %v302_v16 = vpop.f32.mrb[0].mxu0 }
  0xe6   :  { %v123_v17 = vadd.f32 %v302_v16, %v266_v14  ;;  %v314_v18 = vpop.f32.mrb[0].mxu1  ;;  %v114_v20 = vpop.f32.mrb[1].mxu0 }
  0xe7   :  { %v216_v21 = vadd.f32 %v314_v18, %v273_v15  ;;  %v115_v22 = vadd.f32 %v266_v14, %v114_v20  ;;  %v207_v23 = vpop.f32.mrb[1].mxu1  ;;  %v303_v25 = vpop.f32.mrb[2].mxu0 }
  0xe8   :  { %132 = vst.msk [vmem:[#allocation2 + $0x10] sm:$0xff] %vm129_vm1, %v123_v17  ;;  %v208_v26 = vadd.f32 %v273_v15, %v207_v23  ;;  %v126_v27 = vadd.f32 %v303_v25, %v266_v14  ;;  %v315_v28 = vpop.f32.mrb[2].mxu1  ;;  %v117_v30 = vpop.f32.mrb[3].mxu0 }
  0xe9   :  { %v228_v31 = vadd.f32 %v224_v19, %v216_v21  ;;  %130 = vst.msk [vmem:[#allocation2] sm:$0xff] %vm129_vm1, %v115_v22  ;;  %v219_v32 = vadd.f32 %v315_v28, %v273_v15  ;;  %v118_v33 = vadd.f32 %v266_v14, %v117_v30  ;;  %v210_v34 = vpop.f32.mrb[3].mxu1 }
  0xea   :  { %v226_v36 = vadd.f32 %v222_v24, %v208_v26  ;;  %133 = vst.msk [vmem:[#allocation2 + $0x18] sm:$0xff] %vm129_vm1, %v126_v27  ;;  %v211_v37 = vadd.f32 %v273_v15, %v210_v34 }
  0xeb   :  { %232 = vst.msk [vmem:[#allocation4 + $0x10] sm:$0xff] %vm129_vm1, %v228_v31  ;;  %v229_v38 = vadd.f32 %v225_v29, %v219_v32  ;;  %131 = vst.msk [vmem:[#allocation2 + $0x8] sm:$0xff] %vm129_vm1, %v118_v33 }
  0xec   :  { %230 = vst.msk [vmem:[#allocation4] sm:$0xff] %vm129_vm1, %v226_v36  ;;  %v227_v39 = vadd.f32 %v223_v35, %v211_v37 }
  0xed   :  { %339 = shalt.err (!%p336_p4)
}
  0xee   :  { %s340_s15 = scalar_lea.hbm %s530_s6, 512 }
  0xef   :  { %p341_p5 = scmp.ne.s32.totalorder %s530_s6, %s340_s15  ;;  %p344_p6 = scmp.lt.u32.totalorder %s340_s15, %s530_s6 }
  0xf1   :  { %p346_p7 = pnand %p344_p6, %p341_p5 }
  0xf3   :  { %349 = shalt.err (!%p346_p7)
}
  0xf4   :  { %s378_s20 = smov 128   ;;  %s379_s2 = smov 8   ;;  %233 = vst.msk [vmem:[#allocation4 + $0x18] sm:$0xff] %vm129_vm1, %v229_v38  ;;  %231 = vst.msk [vmem:[#allocation4 + $0x8] sm:$0xff] %vm129_vm1, %v227_v39 }
  0xf5   :  { %245 = dma.vmem_to_hbm [thread:$0]  %s476_s27, 512, %s530_s6, [#allocation3], %s378_s20, %s378_s20, %s379_s2  }
  0xf6   :  { %s350_s23 = scalar_lea.vmem %s485_s10, 512  ;;  %p355_p9 = scmp.lt.s32.totalorder %s485_s10, %s485_s10 }
  0xf7   :  { %p351_p8 = scmp.ne.s32.totalorder %s485_s10, %s350_s23  ;;  %p356_p10 = scmp.lt.s32.totalorder %s350_s23, %s350_s23 }
  0xf9   :  { %p357_p11 = por %p356_p10, %p355_p9 }
  0xfb   :  { %p358_p12 = pnand %p357_p11, %p351_p8 }
  0xfd   :  { %361 = shalt.err (!%p358_p12)
}
  0xfe   :  { %s362_s25 = scalar_lea.hbm %s531_s7, 512 }
  0xff   :  { %p363_p13 = scmp.ne.s32.totalorder %s531_s7, %s362_s25  ;;  %p366_p0 = scmp.lt.u32.totalorder %s362_s25, %s531_s7 }
 0x101   :  { %p368_p1 = pnand %p366_p0, %p363_p13 }
 0x103   :  { %371 = shalt.err (!%p368_p1)
}
 0x104   :  { %257 = dma.vmem_to_hbm [thread:$0]  %s485_s10, 512, %s531_s7, [#allocation5], %s378_s20, %s378_s20, %s379_s2  }
 0x105   :  { %372 = dma.done.wait [#allocation3], 512  }
 0x106   :  { %373 = vsyncadd [#allocation3], 4294966784 }
 0x107   :  { %374 = dma.done.wait [#allocation5], 512  }
 0x108   :  { %375 = vsyncadd [#allocation5], 4294966784 }
 0x109   :  { %264 = vsyncpa [#allocation3], 1 }
 0x10a   :  { %265 = vsyncpa [#allocation5], 1 }

</bundles_post_ra>
